<compile_context>
chip_gen: v5e
topology: v5e:2x2
jax: 0.10.0
libtpu: 0.0.40
codegen_flags: <defaults>
</compile_context>

<pallas_src>
import functools

import numpy as np
import jax
import jax.numpy as jnp
from jax import lax
from jax.experimental import pallas as pl
from jax.experimental.pallas import tpu as pltpu


def _round_up(v, m):
    return (v + m - 1) // m * m


# ---------------------------------------------------------------------------
# Kernel: one grid step == one block of `tr` row-pairs (= tr * W2p merged tokens).
# Fused LayerNorm(4C) + Linear(4C -> 2C, bias=False), affine folded into weights.
# ---------------------------------------------------------------------------
def _patch_merging_kernel(r0_ref, r1_ref, w0_ref, w1_ref, bias_ref, o_ref, *,
                          eps, inv_4c, precision):
    # r0_ref : (tr, W2p, 2C)  even-row slab, lane order [x0 | x2]
    # r1_ref : (tr, W2p, 2C)  odd-row  slab, lane order [x1 | x3]
    # w0_ref : (2C, Np)       gamma-folded weight rows matching [x0 | x2]
    # w1_ref : (2C, Np)       gamma-folded weight rows matching [x1 | x3]
    # bias_ref: (1, Np)       beta @ W   (f32)
    # o_ref  : (tr * W2p, Np)
    tr, w2p, two_c = r0_ref.shape
    rows = tr * w2p

    # W2p is sublane-aligned, so collapsing the two leading dims is a free relabel.
    a = r0_ref[...].reshape(rows, two_c).astype(jnp.float32)
    b = r1_ref[...].reshape(rows, two_c).astype(jnp.float32)

    # LayerNorm statistics over the full merged 4C axis (split across the two slabs).
    mean = jnp.sum(a + b, axis=-1, keepdims=True) * inv_4c
    ca = a - mean
    cb = b - mean
    var = jnp.sum(ca * ca + cb * cb, axis=-1, keepdims=True) * inv_4c
    inv = lax.rsqrt(var + eps)                 # EUP slot, effectively free here

    # Normalized slabs; cast back to the streamed/weight dtype so bf16 inputs keep
    # the single-pass MXU path (gamma/beta already folded into w0/w1/bias).
    an = (ca * inv).astype(w0_ref.dtype)
    bn = (cb * inv).astype(w1_ref.dtype)

    out = jnp.dot(an, w0_ref[...], preferred_element_type=jnp.float32,
                  precision=precision)
    out = out + jnp.dot(bn, w1_ref[...], preferred_element_type=jnp.float32,
                        precision=precision)
    out = out + bias_ref[...]
    o_ref[...] = out.astype(o_ref.dtype)


# ---------------------------------------------------------------------------
# Tile-size heuristic (VMEM-budgeted, >=4 grid steps when possible).
# ---------------------------------------------------------------------------
def _choose_row_pairs(nb, w2p, two_c, n_pad, elem_bytes,
                      target_tokens=1024, vmem_budget=12 * 2**20):
    def footprint(tr):
        tok = tr * w2p
        # 2 input slabs + 1 output, each double-buffered, + 2 resident weight tiles.
        return elem_bytes * (4 * tok * two_c + 2 * tok * n_pad + 2 * two_c * n_pad)

    divisors = [d for d in range(1, nb + 1) if nb % d == 0]
    fits = [d for d in divisors if footprint(d) <= vmem_budget] or [1]
    # Prefer >= 4 grid steps (keeps double-buffering alive; v7x splits across 2 TCs).
    pref = [d for d in fits if nb // d >= 4] or fits
    # Cap tokens/tile near the measured HBM-roofline sweet spot (~512-1024 rows).
    capped = [d for d in pref if d * w2p <= target_tokens] or [min(pref)]
    tr = max(capped)
    vmem_limit = int(min(64 * 2**20, max(2 * footprint(tr), 32 * 2**20)))
    return tr, vmem_limit


# ---------------------------------------------------------------------------
# Wrapper: free reshape, weight folding, tiling, pallas_call.
# ---------------------------------------------------------------------------
def patch_merging(x, gamma, beta, w_red, *, input_resolution, eps=1e-5,
                  precision=None):
    """x: (B, H*W, C); gamma/beta: (1, 4C); w_red: (4C, 2C) in (in, out) layout
    (i.e. the transpose of nn.Linear.weight), so y = x @ w_red."""
    H, W = input_resolution
    B, M, C = x.shape
    assert M == H * W, f"input shape must be {input_resolution}"
    assert H % 2 == 0 and W % 2 == 0, f"x size {H}x{W} are not even"
    H2, W2 = H // 2, W // 2
    K, N = 4 * C, 2 * C
    two_c = 2 * C
    elem = np.dtype(x.dtype).itemsize
    sublane = 8 * max(1, 4 // elem)            # 8 for f32, 16 for bf16, 32 for int8

    # Free reshape (contiguous): (B, H*W, C) -> (B*H2, 2, W2, 2C); the 2C lane axis
    # is [col-even channels | col-odd channels] for the given row parity.
    nb = B * H2
    xr = x.reshape(nb, 2, W2, two_c)
    W2p = _round_up(W2, sublane)
    if W2p != W2:
        # TODO(synk): widths whose W/2 is not sublane-aligned need one real pad copy;
        # a fully copy-free path for those shapes is left out of scope.
        xr = jnp.pad(xr, ((0, 0), (0, 0), (0, W2p - W2), (0, 0)))

    # Fold the LayerNorm affine into the projection (one-time, tiny, f32).
    g32 = gamma.astype(jnp.float32).reshape(K, 1)
    w32 = w_red.astype(jnp.float32)
    w_fold = g32 * w32                                    # (4C, 2C)
    bias = beta.astype(jnp.float32).reshape(1, K) @ w32   # (1, 2C)
    # Merged-channel order is [x0 | x1 | x2 | x3]; slab r=0 lanes are [x0 | x2],
    # slab r=1 lanes are [x1 | x3] -> pick the matching weight row blocks.
    w_r0 = jnp.concatenate([w_fold[0 * C:1 * C], w_fold[2 * C:3 * C]], axis=0)
    w_r1 = jnp.concatenate([w_fold[1 * C:2 * C], w_fold[3 * C:4 * C]], axis=0)

    # Lane-dense output: pad N up to a multiple of 128 (unmasked stores).
    n_pad = _round_up(N, 128)
    if n_pad != N:
        w_r0 = jnp.pad(w_r0, ((0, 0), (0, n_pad - N)))
        w_r1 = jnp.pad(w_r1, ((0, 0), (0, n_pad - N)))
        bias = jnp.pad(bias, ((0, 0), (0, n_pad - N)))
    w_r0 = w_r0.astype(x.dtype)
    w_r1 = w_r1.astype(x.dtype)

    tr, vmem_limit = _choose_row_pairs(nb, W2p, two_c, n_pad, elem)
    grid = (nb // tr,)
    block_tokens = tr * W2p

    kernel = functools.partial(_patch_merging_kernel, eps=eps, inv_4c=1.0 / K,
                               precision=precision)

    out2d = pl.pallas_call(
        kernel,
        out_shape=jax.ShapeDtypeStruct((nb * W2p, n_pad), x.dtype),
        grid_spec=pltpu.PrefetchScalarGridSpec(
            num_scalar_prefetch=0,
            grid=grid,
            in_specs=[
                # Same array twice; each spec pins one row parity (squeezed dim).
                pl.BlockSpec((tr, None, W2p, two_c), lambda i: (i, 0, 0, 0)),
                pl.BlockSpec((tr, None, W2p, two_c), lambda i: (i, 1, 0, 0)),
                pl.BlockSpec((two_c, n_pad), lambda i: (0, 0)),   # folded W, even rows
                pl.BlockSpec((two_c, n_pad), lambda i: (0, 0)),   # folded W, odd rows
                pl.BlockSpec((1, n_pad), lambda i: (0, 0)),       # beta @ W
            ],
            out_specs=pl.BlockSpec((block_tokens, n_pad), lambda i: (i, 0)),
        ),
        compiler_params=pltpu.CompilerParams(
            dimension_semantics=("parallel",),
            vmem_limit_bytes=vmem_limit,
        ),
    )(xr, xr, w_r0, w_r1, bias)

    out = out2d.reshape(B, H2, W2p, n_pad)
    if W2p != W2 or n_pad != N:
        out = out[:, :, :W2, :N]
    return out.reshape(B, H2 * W2, N)


# ---------------------------------------------------------------------------
# Pure-JAX reference mirroring the PyTorch forward (for the sanity check).
# ---------------------------------------------------------------------------
def reference(x, gamma, beta, w_red, *, input_resolution, eps=1e-5):
    H, W = input_resolution
    B, M, C = x.shape
    xr = x.reshape(B, H, W, C)
    x0 = xr[:, 0::2, 0::2, :]
    x1 = xr[:, 1::2, 0::2, :]
    x2 = xr[:, 0::2, 1::2, :]
    x3 = xr[:, 1::2, 1::2, :]
    xc = jnp.concatenate([x0, x1, x2, x3], axis=-1).reshape(B, -1, 4 * C)
    mean = jnp.mean(xc, axis=-1, keepdims=True)
    var = jnp.mean((xc - mean) ** 2, axis=-1, keepdims=True)
    xn = (xc - mean) * lax.rsqrt(var + eps) * gamma.reshape(-1) + beta.reshape(-1)
    return jnp.einsum("bmk,kn->bmn", xn, w_red,
                      preferred_element_type=jnp.float32).astype(x.dtype)


if __name__ == "__main__":
    # Small, module-consistent shapes: 2C = 128 (lane-dense output, no padding),
    # W/2 = 16 (sublane-aligned, so the regroup needs zero copies) and 512 merged
    # tokens total -> the heuristic picks 8 row-pairs/tile (128 tokens), grid = 4.
    input_resolution = (32, 32)
    dim = 64
    B = 2
    H, W = input_resolution

    key = jax.random.PRNGKey(0)
    k_x, k_w, k_g, k_b = jax.random.split(key, 4)

    x = jax.random.normal(k_x, (B, H * W, dim), dtype=jnp.float32)
    # nn.Linear(4*dim, 2*dim, bias=False) weight stored as (in, out): y = x @ W.
    w_red = 0.02 * jax.random.normal(k_w, (4 * dim, 2 * dim), dtype=jnp.float32)
    # LayerNorm affine over the merged 4*dim axis (intended Swin semantics; the
    # spec's `nn.LayerNorm()` call with no shape is a PyTorch-side bug).
    gamma = 1.0 + 0.02 * jax.random.normal(k_g, (1, 4 * dim), dtype=jnp.float32)
    beta = 0.02 * jax.random.normal(k_b, (1, 4 * dim), dtype=jnp.float32)

    out = patch_merging(x, gamma, beta, w_red, input_resolution=input_resolution)
    out = jax.block_until_ready(out)

    ref = reference(x, gamma, beta, w_red, input_resolution=input_resolution)
    # Default MXU precision demotes f32 operands to bf16 in both the kernel and the
    # JAX reference matmul; tolerance covers that (a structural bug would be O(1)).
    np.testing.assert_allclose(np.asarray(out), np.asarray(ref), rtol=1e-2, atol=5e-3)

    print("KERNEL_OK")
</pallas_src>

<mosaic_0001>
module attributes {stable_mosaic.version = 11 : i64} {
  func.func @_patch_merging_kernel(%arg0: i32, %arg1: memref<8x1x16x128xf32, #tpu.memory_space<vmem>>, %arg2: memref<8x1x16x128xf32, #tpu.memory_space<vmem>>, %arg3: memref<128x128xf32, #tpu.memory_space<vmem>>, %arg4: memref<128x128xf32, #tpu.memory_space<vmem>>, %arg5: memref<1x128xf32, #tpu.memory_space<vmem>>, %arg6: memref<128x128xf32, #tpu.memory_space<vmem>>) attributes {dimension_semantics = [#tpu.dimension_semantics<parallel>], iteration_bounds = array<i64: 4>, scalar_prefetch = 0 : i64, scratch_operands = 0 : i64, tpu.core_type = #tpu.core_type<tc>, window_params = [{transform_indices = @transform_0, window_bounds = array<i64: 8, 1, 16, 128>}, {transform_indices = @transform_1, window_bounds = array<i64: 8, 1, 16, 128>}, {pipeline_mode = #tpu.pipeline_mode<synchronous>, transform_indices = @transform_2, window_bounds = array<i64: 128, 128>}, {pipeline_mode = #tpu.pipeline_mode<synchronous>, transform_indices = @transform_3, window_bounds = array<i64: 128, 128>}, {pipeline_mode = #tpu.pipeline_mode<synchronous>, transform_indices = @transform_4, window_bounds = array<i64: 1, 128>}, {transform_indices = @transform_5, window_bounds = array<i64: 128, 128>}]} {
    %c0 = arith.constant 0 : index
    %c0_0 = arith.constant 0 : index
    %c0_1 = arith.constant 0 : index
    %c0_2 = arith.constant 0 : index
    %0 = vector.load %arg1[%c0, %c0_0, %c0_1, %c0_2] : memref<8x1x16x128xf32, #tpu.memory_space<vmem>>, vector<8x1x16x128xf32>
    %1 = vector.shape_cast %0 : vector<8x1x16x128xf32> to vector<8x16x128xf32>
    %2 = vector.shape_cast %1 : vector<8x16x128xf32> to vector<128x128xf32>
    %c0_3 = arith.constant 0 : index
    %c0_4 = arith.constant 0 : index
    %c0_5 = arith.constant 0 : index
    %c0_6 = arith.constant 0 : index
    %3 = vector.load %arg2[%c0_3, %c0_4, %c0_5, %c0_6] : memref<8x1x16x128xf32, #tpu.memory_space<vmem>>, vector<8x1x16x128xf32>
    %4 = vector.shape_cast %3 : vector<8x1x16x128xf32> to vector<8x16x128xf32>
    %5 = vector.shape_cast %4 : vector<8x16x128xf32> to vector<128x128xf32>
    %6 = arith.addf %2, %5 : vector<128x128xf32>
    %cst = arith.constant dense<0.000000e+00> : vector<128xf32>
    %7 = vector.multi_reduction <add>, %6, %cst [1] : vector<128x128xf32> to vector<128xf32>
    %8 = vector.shape_cast %7 : vector<128xf32> to vector<128x1xf32>
    %cst_7 = arith.constant 3.906250e-03 : f32
    %9 = vector.broadcast %cst_7 : f32 to vector<128x1xf32>
    %10 = arith.mulf %8, %9 : vector<128x1xf32>
    %11 = vector.broadcast %10 : vector<128x1xf32> to vector<128x128xf32>
    %12 = arith.subf %2, %11 : vector<128x128xf32>
    %13 = vector.broadcast %10 : vector<128x1xf32> to vector<128x128xf32>
    %14 = arith.subf %5, %13 : vector<128x128xf32>
    %15 = arith.mulf %12, %12 : vector<128x128xf32>
    %16 = arith.mulf %14, %14 : vector<128x128xf32>
    %17 = arith.addf %15, %16 : vector<128x128xf32>
    %cst_8 = arith.constant dense<0.000000e+00> : vector<128xf32>
    %18 = vector.multi_reduction <add>, %17, %cst_8 [1] : vector<128x128xf32> to vector<128xf32>
    %19 = vector.shape_cast %18 : vector<128xf32> to vector<128x1xf32>
    %cst_9 = arith.constant 3.906250e-03 : f32
    %20 = vector.broadcast %cst_9 : f32 to vector<128x1xf32>
    %21 = arith.mulf %19, %20 : vector<128x1xf32>
    %cst_10 = arith.constant 9.99999974E-6 : f32
    %22 = vector.broadcast %cst_10 : f32 to vector<128x1xf32>
    %23 = arith.addf %21, %22 : vector<128x1xf32>
    %24 = math.rsqrt %23 : vector<128x1xf32>
    %25 = vector.broadcast %24 : vector<128x1xf32> to vector<128x128xf32>
    %26 = arith.mulf %12, %25 : vector<128x128xf32>
    %27 = vector.broadcast %24 : vector<128x1xf32> to vector<128x128xf32>
    %28 = arith.mulf %14, %27 : vector<128x128xf32>
    %c0_11 = arith.constant 0 : index
    %c0_12 = arith.constant 0 : index
    %29 = vector.load %arg3[%c0_11, %c0_12] : memref<128x128xf32, #tpu.memory_space<vmem>>, vector<128x128xf32>
    %cst_13 = arith.constant dense<0.000000e+00> : vector<128x128xf32>
    %30 = tpu.matmul %26, %29, %cst_13 {dimension_numbers = #tpu.dot_dimension_numbers<[1], [0], [0], [1], [0, 0, 1, 1], [], []>} : vector<128x128xf32>, vector<128x128xf32>, vector<128x128xf32> -> vector<128x128xf32>
    %c0_14 = arith.constant 0 : index
    %c0_15 = arith.constant 0 : index
    %31 = vector.load %arg4[%c0_14, %c0_15] : memref<128x128xf32, #tpu.memory_space<vmem>>, vector<128x128xf32>
    %cst_16 = arith.constant dense<0.000000e+00> : vector<128x128xf32>
    %32 = tpu.matmul %28, %31, %cst_16 {dimension_numbers = #tpu.dot_dimension_numbers<[1], [0], [0], [1], [0, 0, 1, 1], [], []>} : vector<128x128xf32>, vector<128x128xf32>, vector<128x128xf32> -> vector<128x128xf32>
    %33 = arith.addf %30, %32 : vector<128x128xf32>
    %c0_17 = arith.constant 0 : index
    %c0_18 = arith.constant 0 : index
    %34 = vector.load %arg5[%c0_17, %c0_18] : memref<1x128xf32, #tpu.memory_space<vmem>>, vector<1x128xf32>
    %35 = vector.broadcast %34 : vector<1x128xf32> to vector<128x128xf32>
    %36 = arith.addf %33, %35 : vector<128x128xf32>
    %c0_19 = arith.constant 0 : index
    %c0_20 = arith.constant 0 : index
    %37 = vector.load %arg6[%c0_19, %c0_20] : memref<128x128xf32, #tpu.memory_space<vmem>>, vector<128x128xf32>
    tpu.vector_store %arg6[%c0_19, %c0_20], %36 {strides = array<i32>} : memref<128x128xf32, #tpu.memory_space<vmem>>, vector<128x128xf32>,
    return
  }
  func.func @transform_0(%arg0: i32) -> (i32, i32, i32, i32) {
    %c0_i32 = arith.constant 0 : i32
    %c0_i32_0 = arith.constant 0 : i32
    %c0_i32_1 = arith.constant 0 : i32
    %c0_i32_2 = arith.constant 0 : i32
    return %arg0, %c0_i32, %c0_i32_0, %c0_i32_1 : i32, i32, i32, i32
  }
  func.func @transform_1(%arg0: i32) -> (i32, i32, i32, i32) {
    %c1_i32 = arith.constant 1 : i32
    %c0_i32 = arith.constant 0 : i32
    %c0_i32_0 = arith.constant 0 : i32
    %c0_i32_1 = arith.constant 0 : i32
    return %arg0, %c1_i32, %c0_i32, %c0_i32_0 : i32, i32, i32, i32
  }
  func.func @transform_2(%arg0: i32) -> (i32, i32) {
    %c0_i32 = arith.constant 0 : i32
    %c0_i32_0 = arith.constant 0 : i32
    %c0_i32_1 = arith.constant 0 : i32
    return %c0_i32, %c0_i32_0 : i32, i32
  }
  func.func @transform_3(%arg0: i32) -> (i32, i32) {
    %c0_i32 = arith.constant 0 : i32
    %c0_i32_0 = arith.constant 0 : i32
    %c0_i32_1 = arith.constant 0 : i32
    return %c0_i32, %c0_i32_0 : i32, i32
  }
  func.func @transform_4(%arg0: i32) -> (i32, i32) {
    %c0_i32 = arith.constant 0 : i32
    %c0_i32_0 = arith.constant 0 : i32
    %c0_i32_1 = arith.constant 0 : i32
    return %c0_i32, %c0_i32_0 : i32, i32
  }
  func.func @transform_5(%arg0: i32) -> (i32, i32) {
    %c0_i32 = arith.constant 0 : i32
    %c0_i32_0 = arith.constant 0 : i32
    return %arg0, %c0_i32 : i32, i32
  }
}

</mosaic_0001>

<bundles_post_ra>
// kernel: tpu_custom_call.1
= control target key start
LH: loop header
LB: loop body
LE: loop exit
PB: predicated region body
PF: predicated region fallthrough
CT: control target
= control target key end

     0   :  { %s2187_s0 = inlined_call_operand.hbm [shape: f32[32,2,16,128], index: 0, kind: input, shape index: {}]   ;;  %s2188_s1 = inlined_call_operand.hbm [shape: f32[32,2,16,128], index: 1, kind: input, shape index: {}]   ;;  %s2189_s2 = inlined_call_operand.hbm [shape: f32[128,128], index: 2, kind: input, shape index: {}]   ;;  %s2190_s3 = inlined_call_operand.hbm [shape: f32[128,128], index: 3, kind: input, shape index: {}]   ;;  %s2191_s4 = inlined_call_operand.vmem [shape: f32[1,128], index: 4, kind: input, shape index: {}]   ;;  %s2192_s5 = inlined_call_operand.hbm [shape: f32[512,128], index: 5, kind: output, shape index: {}]  }
   0x1   :  { %2194 = sst [smem:[#allocation22_spill]] %s2187_s0 }
   0x2   :  { %10 = vsyncpa [#allocation3], 0 }
   0x3   :  { %12 = vsyncpa [#allocation3 + $0x1], 0 }
   0x4   :  { %13 = vsyncpa [#allocation6], 0 }
   0x5   :  { %15 = vsyncpa [#allocation6 + $0x1], 0 }
   0x6   :  { %16 = vsyncpa [#allocation9], 0 }
   0x7   :  { %17 = vsyncpa [#allocation4], 0 }
   0x8   :  { %19 = vsyncpa [#allocation4 + $0x1], 0  ;;  %s1517_s18 = smov 0   ;;  %s1519_s19 = smov 0  }
   0x9   :  { %s1521_s20 = smov 0   ;;  %s1523_s21 = smov 0  }
   0xa LB: > { %s1538_s22 = sadd.s32 4294967295, %s1467_s21   ;;  %s1139_s23 = sadd.s32 4294967294, %s1467_s21   ;;  %s1467_s21 = sphi %s1523_s21, %s2205_s21   ;;  %s1463_s20 = sphi %s1521_s20, %s2204_s20   ;;  %s1459_s19 = sphi %s1519_s19, %s2203_s19   ;;  %s1455_s18 = sphi %s1517_s18, %s2202_s18  }
   0xb   : > { %s1542_s24 = sadd.s32 1, %s1467_s21   ;;  %s32_s25 = sadd.s32 1, %s1463_s20 }
   0xc   : > { %s29_s26 = ssub.s32 %s1467_s21, %s1542_s24  ;;  %p39_p0 = scmp.ne.s32.totalorder %s1463_s20, %s1459_s19 }
   0xd   : > { %p30_p1 = scmp.eq.s32.totalorder %s29_s26, 0  ;;  %p40_p2 = scmp.eq.s32.totalorder %s1467_s21, 0 }
   0xe   : > { %p45_p3 = scmp.ne.s32.totalorder %s1459_s19, %s1455_s18  ;;  %p46_p4 = scmp.eq.s32.totalorder %s1538_s22, 0 }
   0xf   : > { %s1554_s27 = scalar_select %p30_p1, %s1463_s20, %s32_s25  }
  0x10   : > { %p1556_p5 = por %p40_p2, %p39_p0  ;;  %p1562_p6 = por %p46_p4, %p45_p3 }
  0x11   : > { %p158_p7 = scmp.eq.s32.totalorder %s1538_s22, 3  ;;  %p164_p8 = scmp.eq.s32.totalorder %s1139_s23, 3 }
  0x12   : > { %p1140_p9 = scmp.ge.s32.totalorder %s1467_s21, 1  ;;  %p171_p10 = scmp.lt.s32.totalorder %s1467_s21, 5 }
  0x13   : > { %p1569_p11 = por %p158_p7, %p39_p0  ;;  %p1573_p12 = por %p164_p8, %p45_p3 }
  0x14   : > { %p1577_p13 = pnand %p1140_p9, %p171_p10  ;;  %s182_s10 = sshll.u32 %s2189_s2, 4  ;;  %s183_s10 = int_to_ptr.hbm [resolvable:$true] %s182_s10 }
  0x15   : > { %s1469_s11 = smov [#allocation7]   ;;  %s196_s15 = sshll.u32 %s2190_s3, 4  ;;  %s197_s15 = int_to_ptr.hbm [resolvable:$true] %s196_s15 }
  0x16   : > { %p1230_p1 = pneg %p1577_p13  ;;  %s184_s12 = sshll.u32 %s1469_s11, 4  ;;  %s185_s12 = int_to_ptr.vmem [resolvable:$true] %s184_s12 }
  0x17   : > { %s1470_s16 = smov 128   ;;  %s1471_s17 = smov 8  }
  0x18   : > { %p1231_p0 = pnand %p1230_p1, %p46_p4  ;;  %s1472_s23 = smov [#allocation8]  }
  0x19   : > { %s198_s25 = sshll.u32 %s1472_s23, 4  ;;  %p1143_p2 = scmp.ge.s32.totalorder %s1467_s21, 4  ;;  %s199_s25 = int_to_ptr.vmem [resolvable:$true] %s198_s25 }
  0x1a   : > { %1233 = dma.hbm_to_vmem [thread:$0]  (!%p1231_p0), %s183_s10, 2048, %s185_s12, [#allocation6], %s1470_s16, %s1470_s16, %s1471_s17  }
  0x1b   : > { %1236 = dma.hbm_to_vmem [thread:$0]  (!%p1231_p0), %s197_s15, 2048, %s199_s25, [#allocation9], %s1470_s16, %s1470_s16, %s1471_s17  }
  0x1c   : > { %211 = sbr.rel (%p1143_p2) target bundleno = 61 (0x3d), region = 28 }
  0x21   : > { %s215_s26 = sand.u32 1, %s1463_s20   ;;  %s2193_s8 = sshll.u32 %s1467_s21, 8 }
  0x22   : > { %s1594_s9 = sshll.u32 %s215_s26, 7  ;;  %s2200_s0 = sld [smem:[#allocation22_spill]] }
  0x23   : > { %s1206_s13 = scalar_select %p1556_p5, [#allocation0], [#allocation15] }
  0x24   : > { %s219_s15 = scalar_lea.vmem [#allocation2], %s1594_s9  ;;  %s1473_s23 = smov 512  }
  0x25   : > { %s240_s16 = sshll.u32 %s219_s15, 4  ;;  %s230_s17 = sld [smem:[%s1206_s13]]   ;;  %s241_s16 = int_to_ptr.vmem [resolvable:$true] %s240_s16 }
  0x26   : > { %1207 = sst [smem:[#allocation12]] (%p1556_p5), %s1473_s23  ;;  %s1474_s25 = smov 256  }
  0x27   : > { %1208 = sst [smem:[#allocation12 + $0x1]] (%p1556_p5), %s1474_s25  ;;  %s1475_s10 = smov 2  }
  0x28   : > { %s225_s12 = scalar_lea.hbm %s2200_s0, %s2193_s8  ;;  %1209 = sst [smem:[#allocation12 + $0x2]] (%p1556_p5), %s1475_s10 }
  0x29   : > { %s238_s14 = sshll.u32 %s225_s12, 4  ;;  %s1476_s11 = smov 128   ;;  %s239_s14 = int_to_ptr.hbm [resolvable:$true] %s238_s14 }
  0x2a   : > { %1210 = sst [smem:[#allocation12 + $0x3]] (%p1556_p5), %s1476_s11  ;;  %s1477_s13 = smov 8  }
  0x2b   : > { %s1148_s12 = sshll.u32 %s230_s17, 26  ;;  %1211 = sst [smem:[#allocation12 + $0x4]] (%p1556_p5), %s1476_s11 }
  0x2c   : > { %s1149_s15 = sadd.s32 134217728, %s1148_s12  ;;  %1212 = sst [smem:[#allocation12 + $0x5]] (%p1556_p5), %s1477_s13 }
  0x2d   : > { %s216_s8 = scalar_lea.sflag [#allocation3], %s215_s26  ;;  %s1478_s0 = smov [#allocation11]  }
  0x2e   : > { %1213 = dma.general (%p1556_p5), %s239_s14, 2048, %s241_s16, %s216_s8, %s1478_s0, [#allocation12], %s1149_s15, 0  }
  0x2f   : > { %s263_s23 = sand.u32 1, %s1467_s21   ;;  %s2201_s25 = sshll.u32 %s1467_s21, 8 }
  0x30   : > { %s1063_s11 = scalar_lea.hbm %s2188_s1, %s2201_s25  ;;  %s267_s13 = scalar_lea.vmem [#allocation5], %s1594_s9 }
  0x31   : > { %s1064_s12 = scalar_lea.hbm %s1063_s11, 16  ;;  %s289_s26 = sshll.u32 %s267_s13, 4  ;;  %s290_s26 = int_to_ptr.vmem [resolvable:$true] %s289_s26 }
  0x32   : > { %s1214_s0 = scalar_select %p1556_p5, [#allocation0], [#allocation16] }
  0x33   : > { %s287_s8 = sshll.u32 %s1064_s12, 4  ;;  %s1479_s16 = smov 512   ;;  %s288_s8 = int_to_ptr.hbm [resolvable:$true] %s287_s8 }
  0x34   : > { %s279_s14 = sld [smem:[%s1214_s0]]   ;;  %s1480_s15 = smov 256  }
  0x35   : > { %1215 = sst [smem:[#allocation14]] (%p1556_p5), %s1479_s16  ;;  %s1481_s25 = smov 2  }
  0x36   : > { %1216 = sst [smem:[#allocation14 + $0x1]] (%p1556_p5), %s1480_s15  ;;  %s1482_s9 = smov 128  }
  0x37   : > { %1217 = sst [smem:[#allocation14 + $0x2]] (%p1556_p5), %s1481_s25  ;;  %s1483_s11 = smov 8  }
  0x38   : > { %1218 = sst [smem:[#allocation14 + $0x3]] (%p1556_p5), %s1482_s9  ;;  %s264_s12 = scalar_lea.sflag [#allocation6], %s263_s23 }
  0x39   : > { %1219 = sst [smem:[#allocation14 + $0x4]] (%p1556_p5), %s1482_s9  ;;  %s1484_s13 = smov [#allocation13]  }
  0x3a   : > { %s1153_s17 = sshll.u32 %s279_s14, 26  ;;  %1220 = sst [smem:[#allocation14 + $0x5]] (%p1556_p5), %s1483_s11 }
  0x3b   : > { %s1154_s10 = sadd.s32 134217728, %s1153_s17 }
  0x3c   : > { %1221 = dma.general (%p1556_p5), %s288_s8, 2048, %s290_s26, %s264_s12, %s1484_s13, [#allocation14], %s1154_s10, 0  }
  0x3d PF: > { %314 = sbr.rel (%p1577_p13) target bundleno = 618 (0x26a), region = 40  ;;  %s1644_s0 = sand.u32 (!%p1577_p13), 1, %s1459_s19  }
  0x3e   : > { %s1647_s14 = sshll.u32 (!%p1577_p13), %s1644_s0, 7  ;;  %s317_s16 = scalar_lea.sflag (!%p1577_p13), [#allocation3], %s1644_s0 }
  0x3f   : > { %s1651_s15 = scalar_lea.vmem (!%p1577_p13), [#allocation2], %s1647_s14 }
  0x42   : > { %1434 = dma.done.wait (%p1562_p6), %s317_s16, 2048  }
  0x43   : > { %1436 = vsyncadd (%p1562_p6), %s317_s16, 4294965248  ;;  %s326_s28 = sand.u32 1, %s1538_s22   ;;  %s1659_s23 = scalar_lea.vmem [#allocation5], %s1647_s14 }
  0x44   : > { %s327_s7 = scalar_lea.sflag [#allocation6], %s326_s28 }
  0x45   : > { %1438 = dma.done.wait (%p1562_p6), %s327_s7, 2048  }
  0x46   : > { %1440 = vsyncadd (%p1562_p6), %s327_s7, 4294965248 }
  0x47   : > { %1442 = dma.done.wait (%p46_p4), [#allocation6], 2048  }
  0x48   : > { %1444 = vsyncadd (%p46_p4), [#allocation6], 4294965248 }
  0x49   : > { %1446 = dma.done.wait (%p46_p4), [#allocation9], 2048  }
  0x4a   : > { %1448 = vsyncadd (%p46_p4), [#allocation9], 4294965248  ;;  %v1674_v0 = vld [vmem:[%s1651_s15 + $0x50] sm:$0xff]  ;;  %v385_v2 = vld [vmem:[%s1651_s15 + $0x48] sm:$0xff]  ;;  %s2119_s8 = scalar_lea.vmem [#allocation10], %s1647_s14  ;;  %s1169_s25 = sshll.u32 %s1538_s22, 7 }
  0x4b   : > { %v1677_v1 = vld [vmem:[%s1659_s23 + $0x50] sm:$0xff]  ;;  %v401_v4 = vld [vmem:[%s1659_s23 + $0x48] sm:$0xff]  ;;  %v384_v5 = vld [vmem:[%s1651_s15 + $0x40] sm:$0xff]  ;;  %s1018_s10 = scalar_lea.hbm %s2192_s5, %s1169_s25  ;;  %s1019_s11 = sshll.u32 %s2119_s8, 4  ;;  %s1020_s11 = int_to_ptr.vmem [resolvable:$true] %s1019_s11 }
  0x4c   : > { %v418_v3 = vadd.f32 %v1677_v1, %v1674_v0  ;;  %v400_v6 = vld [vmem:[%s1659_s23 + $0x40] sm:$0xff]  ;;  %v417_v7 = vadd.f32 %v401_v4, %v385_v2  ;;  %v1686_v9 = vld [vmem:[%s1651_s15 + $0x10] sm:$0xff]  ;;  %v1692_v11 = vld [vmem:[%s1651_s15 + $0x8] sm:$0xff]  ;;  %s1021_s12 = sshll.u32 %s1018_s10, 4  ;;  %s1007_s22 = scalar_lea.sflag [#allocation4], %s1644_s0  ;;  %s1022_s12 = int_to_ptr.hbm [resolvable:$true] %s1021_s12 }
  0x4d   : > { %v416_v8 = vadd.f32 %v400_v6, %v384_v5  ;;  %v1689_v10 = vld [vmem:[%s1659_s23 + $0x10] sm:$0xff]  ;;  %v1695_v12 = vld [vmem:[%s1659_s23 + $0x8] sm:$0xff]  ;;  %v1698_v13 = vld [vmem:[%s1651_s15] sm:$0xff]  ;;  %s1403_s13 = sshra.s32 %s1022_s12, 4  ;;  %s1409_s28 = scalar_lea.hbm %s2192_s5, 512  ;;  %s1404_s13 = int_to_ptr.hbm [resolvable:$true] %s1403_s13 }
  0x4e   : > { %444 = vadd.xlane.f32.xlu2 %v418_v3  ;;  %442 = vadd.xlane.f32.xlu1 %v417_v7  ;;  %v1701_v14 = vld [vmem:[%s1659_s23] sm:$0xff]  ;;  %v410_v15 = vadd.f32 %v1689_v10, %v1686_v9  ;;  %v409_v16 = vadd.f32 %v1695_v12, %v1692_v11  ;;  %v1716_v20 = vld [vmem:[%s1651_s15 + $0x18] sm:$0xff]  ;;  %v1734_v27 = vld [vmem:[%s1651_s15 + $0x28] sm:$0xff]  ;;  %s1405_s14 = scalar_lea.hbm %s1404_s13, 128  ;;  %p1410_p6 = scmp.lt.s32.totalorder %s1404_s13, %s2192_s5 }
  0x4f   : > { %440 = vadd.xlane.f32.xlu0 %v416_v8  ;;  %v408_v17 = vadd.f32 %v1701_v14, %v1698_v13  ;;  %v1710_v18 = vld [vmem:[%s1651_s15 + $0x60] sm:$0xff]  ;;  %v1719_v21 = vld [vmem:[%s1659_s23 + $0x18] sm:$0xff]  ;;  %v1737_v28 = vld [vmem:[%s1659_s23 + $0x28] sm:$0xff]  ;;  %p1406_p3 = scmp.ne.s32.totalorder %s1404_s13, %s1405_s14  ;;  %p1411_p7 = scmp.lt.s32.totalorder %s1409_s28, %s1405_s14 }
  0x50   : > { %v1713_v19 = vld [vmem:[%s1659_s23 + $0x60] sm:$0xff]  ;;  %v1722_v22 = vld [vmem:[%s1651_s15 + $0x58] sm:$0xff]  ;;  %v411_v25 = vadd.f32 %v1719_v21, %v1716_v20  ;;  %v1740_v29 = vld [vmem:[%s1651_s15 + $0x68] sm:$0xff]  ;;  %v413_v33 = vadd.f32 %v1737_v28, %v1734_v27 }
  0x51   : > { %v1725_v23 = vld [vmem:[%s1659_s23 + $0x58] sm:$0xff]  ;;  %v420_v24 = vadd.f32 %v1713_v19, %v1710_v18  ;;  %v1743_v30 = vld [vmem:[%s1659_s23 + $0x68] sm:$0xff]  ;;  %v1746_v31 = vld [vmem:[%s1651_s15 + $0x20] sm:$0xff]  ;;  %p1407_p4 = pnand %p1406_p3, %p1569_p11  ;;  %p1412_p8 = por %p1411_p7, %p1410_p6 }
  0x52   : > { %v419_v26 = vadd.f32 %v1725_v23, %v1722_v22  ;;  %v1749_v32 = vld [vmem:[%s1659_s23 + $0x20] sm:$0xff]  ;;  %v421_v34 = vadd.f32 %v1743_v30, %v1740_v29  ;;  %v1758_v36 = vld [vmem:[%s1651_s15 + $0x30] sm:$0xff]  ;;  %v1800_v3 = vld [vmem:[%s1651_s15 + $0x78] sm:$0xff] }
  0x53   : > { %v412_v35 = vadd.f32 %v1749_v32, %v1746_v31  ;;  %v1761_v37 = vld [vmem:[%s1659_s23 + $0x30] sm:$0xff]  ;;  %p1408_p5 = pneg %p1407_p4 }
  0x54   : > { %v1764_v38 = vld [vmem:[%s1651_s15 + $0x70] sm:$0xff]  ;;  %v414_v40 = vadd.f32 %v1761_v37, %v1758_v36 }
  0x55   : > { %v1767_v39 = vld [vmem:[%s1659_s23 + $0x70] sm:$0xff]  ;;  %p1413_p9 = pnand %p1412_p8, %p1408_p5 }
  0x56   : > { %428 = vadd.xlane.f32.xlu2 %v410_v15  ;;  %426 = vadd.xlane.f32.xlu1 %v409_v16  ;;  %v422_v41 = vadd.f32 %v1767_v39, %v1764_v38 }
  0x57   : > { %424 = vadd.xlane.f32.xlu0 %v408_v17 }
  0x5e   : > { %448 = vadd.xlane.f32.xlu2 %v420_v24  ;;  %430 = vadd.xlane.f32.xlu1 %v411_v25 }
  0x5f   : > { %446 = vadd.xlane.f32.xlu0 %v419_v26 }
  0x66   : > { %434 = vadd.xlane.f32.xlu2 %v413_v33  ;;  %450 = vadd.xlane.f32.xlu1 %v421_v34 }
  0x67   : > { %432 = vadd.xlane.f32.xlu0 %v412_v35 }
  0x6e   : > { %436 = vadd.xlane.f32.xlu2 %v414_v40  ;;  %v839_v40 = vld [vmem:[#allocation8 + $0x78] sm:$0xff] }
  0x6f   : > { %452 = vadd.xlane.f32.xlu0 %v422_v41  ;;  %v823_v41 = vld [vmem:[#allocation7 + $0x78] sm:$0xff]  ;;  %1170 = vmatpush.msra.mxu2 %v839_v40 }
  0x70   : > { %1186 = vmatpush.msra.mxu3 %v823_v41  ;;  %840 = vmatpush.msra.mxu0 %v839_v40 }
  0x71   : > { %905 = vmatpush.msra.mxu1 %v823_v41 }
  0xc1   : > { %v445_v42 = vpop.xlane.xlu2 %444  ;;  %v443_v44 = vpop.xlane.xlu1 %442 }
  0xc2   : > { %v466_v43 = vmul.f32 0.00390625, %v445_v42  ;;  %v441_v45 = vpop.xlane.xlu0 %440  ;;  %v465_v46 = vmul.f32 0.00390625, %v443_v44  ;;  %v838_v42 = vld [vmem:[#allocation8 + $0x70] sm:$0xff] }
  0xc3   : > { %v464_v47 = vmul.f32 0.00390625, %v441_v45  ;;  %v1834_v45 = vld [vmem:[%s1651_s15 + $0x38] sm:$0xff]  ;;  %1171 = vmatpush.msra.mxu2 %v838_v42  ;;  %841 = vmatpush.msra.mxu0 %v838_v42 }
  0xc4   : > { %v1773_v48 = vsub.f32 %v385_v2, %v465_v46  ;;  %v1775_v49 = vsub.f32 %v401_v4, %v465_v46  ;;  %v1782_v52 = vsub.f32 %v1674_v0, %v466_v43  ;;  %v1785_v53 = vsub.f32 %v1677_v1, %v466_v43  ;;  %v1803_v4 = vld [vmem:[%s1659_s23 + $0x78] sm:$0xff] }
  0xc5   : > { %v1777_v50 = vsub.f32 %v384_v5, %v464_v47  ;;  %v1779_v51 = vsub.f32 %v400_v6, %v464_v47  ;;  %v423_v8 = vadd.f32 %v1803_v4, %v1800_v3  ;;  %v1837_v46 = vld [vmem:[%s1659_s23 + $0x38] sm:$0xff]  ;;  %v822_v47 = vld [vmem:[#allocation7 + $0x70] sm:$0xff] }
  0xc6   : > { %v513_v54 = vmul.f32 %v1773_v48, %v1773_v48  ;;  %v529_v55 = vmul.f32 %v1775_v49, %v1775_v49  ;;  %v514_v63 = vmul.f32 %v1782_v52, %v1782_v52  ;;  %v530_v0 = vmul.f32 %v1785_v53, %v1785_v53  ;;  %1187 = vmatpush.msra.mxu3 %v822_v47 }
  0xc7   : > { %v512_v56 = vmul.f32 %v1777_v50, %v1777_v50  ;;  %v528_v57 = vmul.f32 %v1779_v51, %v1779_v51  ;;  %906 = vmatpush.msra.mxu1 %v822_v47 }
  0xc8   : > { %v545_v59 = vadd.f32 %v529_v55, %v513_v54  ;;  %v546_v7 = vadd.f32 %v530_v0, %v514_v63 }
  0xc9   : > { %v429_v58 = vpop.xlane.xlu2 %428  ;;  %v544_v60 = vadd.f32 %v528_v57, %v512_v56  ;;  %v427_v61 = vpop.xlane.xlu1 %426  ;;  %v837_v56 = vld [vmem:[#allocation8 + $0x68] sm:$0xff] }
  0xca   : > { %v425_v62 = vpop.xlane.xlu0 %424  ;;  %v457_v1 = vmul.f32 0.00390625, %v427_v61  ;;  %570 = vadd.xlane.f32.xlu2 %v545_v59  ;;  %v458_v35 = vmul.f32 0.00390625, %v429_v58  ;;  %v821_v58 = vld [vmem:[#allocation7 + $0x68] sm:$0xff]  ;;  %1172 = vmatpush.msra.mxu2 %v837_v56 }
  0xcb   : > { %v456_v2 = vmul.f32 0.00390625, %v425_v62  ;;  %568 = vadd.xlane.f32.xlu1 %v544_v60  ;;  %v836_v62 = vld [vmem:[#allocation8 + $0x60] sm:$0xff]  ;;  %1188 = vmatpush.msra.mxu3 %v821_v58 }
  0xcc   : > { %v1814_v15 = vsub.f32 %v1692_v11, %v457_v1  ;;  %v1817_v16 = vsub.f32 %v1695_v12, %v457_v1  ;;  %v1850_v59 = vsub.f32 %v1686_v9, %v458_v35  ;;  %1173 = vmatpush.msra.mxu2 %v836_v62  ;;  %842 = vmatpush.msra.mxu0 %v837_v56 }
  0xcd   : > { %v1806_v5 = vsub.f32 %v1698_v13, %v456_v2  ;;  %v1809_v6 = vsub.f32 %v1701_v14, %v456_v2  ;;  %v820_v2 = vld [vmem:[#allocation7 + $0x60] sm:$0xff]  ;;  %907 = vmatpush.msra.mxu1 %v821_v58 }
  0xce   : > { %v505_v12 = vmul.f32 %v1814_v15, %v1814_v15  ;;  %v521_v34 = vmul.f32 %v1817_v16, %v1817_v16  ;;  %1189 = vmatpush.msra.mxu3 %v820_v2  ;;  %843 = vmatpush.msra.mxu0 %v836_v62 }
  0xcf   : > { %v504_v17 = vmul.f32 %v1806_v5, %v1806_v5  ;;  %v520_v13 = vmul.f32 %v1809_v6, %v1809_v6  ;;  %908 = vmatpush.msra.mxu1 %v820_v2  ;;  %v834_v2 = vld [vmem:[#allocation8 + $0x50] sm:$0xff] }
  0xd1   : > { %v449_v24 = vpop.xlane.xlu2 %448  ;;  %v536_v25 = vadd.f32 %v520_v13, %v504_v17  ;;  %v431_v14 = vpop.xlane.xlu1 %430  ;;  %v506_v17 = vmul.f32 %v1850_v59, %v1850_v59 }
  0xd2   : > { %v447_v26 = vpop.xlane.xlu0 %446  ;;  %v459_v33 = vmul.f32 0.00390625, %v431_v14  ;;  %572 = vadd.xlane.f32.xlu2 %v546_v7  ;;  %v468_v63 = vmul.f32 0.00390625, %v449_v24 }
  0xd3   : > { %454 = vadd.xlane.f32.xlu1 %v423_v8  ;;  %v467_v11 = vmul.f32 0.00390625, %v447_v26  ;;  %552 = vadd.xlane.f32.xlu0 %v536_v25 }
  0xd4   : > { %v1828_v43 = vsub.f32 %v1716_v20, %v459_v33  ;;  %v1831_v44 = vsub.f32 %v1719_v21, %v459_v33  ;;  %v537_v20 = vadd.f32 %v521_v34, %v505_v12  ;;  %v1872_v14 = vsub.f32 %v1710_v18, %v468_v63 }
  0xd5   : > { %v1840_v54 = vsub.f32 %v1722_v22, %v467_v11  ;;  %v1843_v55 = vsub.f32 %v1725_v23, %v467_v11  ;;  %v1853_v22 = vsub.f32 %v1689_v10, %v458_v35  ;;  %v415_v23 = vadd.f32 %v1837_v46, %v1834_v45 }
  0xd6   : > { %v507_v21 = vmul.f32 %v1828_v43, %v1828_v43  ;;  %v523_v57 = vmul.f32 %v1831_v44, %v1831_v44  ;;  %v1885_v12 = vsub.f32 %v1713_v19, %v468_v63  ;;  %v516_v41 = vmul.f32 %v1872_v14, %v1872_v14 }
  0xd7   : > { %v515_v9 = vmul.f32 %v1840_v54, %v1840_v54  ;;  %v531_v10 = vmul.f32 %v1843_v55, %v1843_v55  ;;  %v522_v13 = vmul.f32 %v1853_v22, %v1853_v22 }
  0xd8   : > { %v539_v61 = vadd.f32 %v523_v57, %v507_v21  ;;  %v532_v21 = vmul.f32 %v1885_v12, %v1885_v12 }
  0xd9   : > { %v435_v60 = vpop.xlane.xlu2 %434  ;;  %v451_v0 = vpop.xlane.xlu1 %450  ;;  %v547_v26 = vadd.f32 %v531_v10, %v515_v9  ;;  %v538_v18 = vadd.f32 %v522_v13, %v506_v17  ;;  %v835_v9 = vld [vmem:[#allocation8 + $0x58] sm:$0xff]  ;;  %v817_v17 = vld [vmem:[#allocation7 + $0x48] sm:$0xff]  ;;  %v832_v13 = vld [vmem:[#allocation8 + $0x40] sm:$0xff] }
  0xda   : > { %v433_v1 = vpop.xlane.xlu0 %432  ;;  %v469_v7 = vmul.f32 0.00390625, %v451_v0  ;;  %558 = vadd.xlane.f32.xlu2 %v539_v61  ;;  %v461_v47 = vmul.f32 0.00390625, %v435_v60  ;;  %v548_v63 = vadd.f32 %v532_v21, %v516_v41  ;;  %v819_v10 = vld [vmem:[#allocation7 + $0x58] sm:$0xff]  ;;  %1174 = vmatpush.msra.mxu2 %v835_v9  ;;  %v825_v21 = vld [vmem:[#allocation8 + $0x8] sm:$0xff] }
  0xdb   : > { %554 = vadd.xlane.f32.xlu1 %v537_v20  ;;  %v460_v8 = vmul.f32 0.00390625, %v433_v1  ;;  %438 = vadd.xlane.f32.xlu0 %v415_v23  ;;  %v827_v41 = vld [vmem:[#allocation8 + $0x18] sm:$0xff] }
  0xdc   : > { %v1866_v24 = vsub.f32 %v1740_v29, %v469_v7  ;;  %v1869_v25 = vsub.f32 %v1743_v30, %v469_v7  ;;  %v1915_v61 = vsub.f32 %v1737_v28, %v461_v47  ;;  %1190 = vmatpush.msra.mxu3 %v819_v10  ;;  %v818_v7 = vld [vmem:[#allocation7 + $0x50] sm:$0xff]  ;;  %844 = vmatpush.msra.mxu0 %v835_v9 }
  0xdd   : > { %v1875_v33 = vsub.f32 %v1746_v31, %v460_v8  ;;  %v1878_v11 = vsub.f32 %v1749_v32, %v460_v8  ;;  %909 = vmatpush.msra.mxu1 %v819_v10  ;;  %1175 = vmatpush.msra.mxu2 %v834_v2  ;;  %v833_v8 = vld [vmem:[#allocation8 + $0x48] sm:$0xff] }
  0xde   : > { %v517_v29 = vmul.f32 %v1866_v24, %v1866_v24  ;;  %v533_v30 = vmul.f32 %v1869_v25, %v1869_v25  ;;  %1191 = vmatpush.msra.mxu3 %v818_v7  ;;  %845 = vmatpush.msra.mxu0 %v834_v2 }
  0xdf   : > { %v508_v42 = vmul.f32 %v1875_v33, %v1875_v33  ;;  %v524_v19 = vmul.f32 %v1878_v11, %v1878_v11  ;;  %910 = vmatpush.msra.mxu1 %v818_v7  ;;  %1176 = vmatpush.msra.mxu2 %v833_v8 }
  0xe0   : > { %v549_v35 = vadd.f32 %v533_v30, %v517_v29  ;;  %1192 = vmatpush.msra.mxu3 %v817_v17  ;;  %846 = vmatpush.msra.mxu0 %v833_v8  ;;  %v831_v29 = vld [vmem:[#allocation8 + $0x38] sm:$0xff] }
  0xe1   : > { %v437_v34 = vpop.xlane.xlu2 %436  ;;  %911 = vmatpush.msra.mxu1 %v817_v17  ;;  %1177 = vmatpush.msra.mxu2 %v832_v13  ;;  %v815_v30 = vld [vmem:[#allocation7 + $0x38] sm:$0xff] }
  0xe2   : > { %v462_v40 = vmul.f32 0.00390625, %v437_v34  ;;  %v453_v31 = vpop.xlane.xlu0 %452  ;;  %578 = vadd.xlane.f32.xlu2 %v549_v35  ;;  %847 = vmatpush.msra.mxu0 %v832_v13  ;;  %v814_v34 = vld [vmem:[#allocation7 + $0x30] sm:$0xff]  ;;  %v829_v35 = vld [vmem:[#allocation8 + $0x28] sm:$0xff] }
  0xe3   : > { %574 = vadd.xlane.f32.xlu1 %v547_v26  ;;  %v470_v32 = vmul.f32 0.00390625, %v453_v31  ;;  %556 = vadd.xlane.f32.xlu0 %v538_v18  ;;  %v816_v26 = vld [vmem:[#allocation7 + $0x40] sm:$0xff]  ;;  %v830_v18 = vld [vmem:[#allocation8 + $0x30] sm:$0xff] }
  0xe4   : > { %v1894_v56 = vsub.f32 %v1758_v36, %v462_v40  ;;  %v1897_v20 = vsub.f32 %v1761_v37, %v462_v40  ;;  %v540_v36 = vadd.f32 %v524_v19, %v508_v42  ;;  %v1912_v37 = vsub.f32 %v1734_v27, %v461_v47  ;;  %1193 = vmatpush.msra.mxu3 %v816_v26  ;;  %v813_v40 = vld [vmem:[#allocation7 + $0x28] sm:$0xff]  ;;  %v828_v31 = vld [vmem:[#allocation8 + $0x20] sm:$0xff]  ;;  %v811_v42 = vld [vmem:[#allocation7 + $0x18] sm:$0xff] }
  0xe5   : > { %v1906_v23 = vsub.f32 %v1764_v38, %v470_v32  ;;  %v1909_v60 = vsub.f32 %v1767_v39, %v470_v32  ;;  %v525_v27 = vmul.f32 %v1915_v61, %v1915_v61  ;;  %912 = vmatpush.msra.mxu1 %v816_v26  ;;  %1178 = vmatpush.msra.mxu2 %v831_v29  ;;  %v812_v32 = vld [vmem:[#allocation7 + $0x20] sm:$0xff]  ;;  %v826_v19 = vld [vmem:[#allocation8 + $0x10] sm:$0xff] }
  0xe6   : > { %v510_v57 = vmul.f32 %v1894_v56, %v1894_v56  ;;  %v526_v58 = vmul.f32 %v1897_v20, %v1897_v20  ;;  %v509_v39 = vmul.f32 %v1912_v37, %v1912_v37  ;;  %1194 = vmatpush.msra.mxu3 %v815_v30  ;;  %848 = vmatpush.msra.mxu0 %v831_v29  ;;  %v810_v47 = vld [vmem:[#allocation7 + $0x10] sm:$0xff] }
  0xe7   : > { %v518_v0 = vmul.f32 %v1906_v23, %v1906_v23  ;;  %v534_v38 = vmul.f32 %v1909_v60, %v1909_v60  ;;  %913 = vmatpush.msra.mxu1 %v815_v30  ;;  %1179 = vmatpush.msra.mxu2 %v830_v18 }
  0xe8   : > { %v542_v62 = vadd.f32 %v526_v58, %v510_v57  ;;  %v541_v28 = vadd.f32 %v525_v27, %v509_v39  ;;  %1195 = vmatpush.msra.mxu3 %v814_v34  ;;  %849 = vmatpush.msra.mxu0 %v830_v18  ;;  %v809_v57 = vld [vmem:[#allocation7 + $0x8] sm:$0xff]  ;;  %v824_v58 = vld [vmem:[#allocation8] sm:$0xff] }
  0xe9   : > { %v550_v1 = vadd.f32 %v534_v38, %v518_v0  ;;  %914 = vmatpush.msra.mxu1 %v814_v34  ;;  %1180 = vmatpush.msra.mxu2 %v829_v35 }
  0xea   : > { %564 = vadd.xlane.f32.xlu2 %v542_v62  ;;  %1196 = vmatpush.msra.mxu3 %v813_v40 }
  0xeb   : > { %560 = vadd.xlane.f32.xlu1 %v540_v36  ;;  %576 = vadd.xlane.f32.xlu0 %v548_v63  ;;  %v808_v36 = vld [vmem:[#allocation7] sm:$0xff] }
  0xec   : > { %850 = vmatpush.msra.mxu0 %v829_v35  ;;  %915 = vmatpush.msra.mxu1 %v813_v40 }
  0xed   : > { %1181 = vmatpush.msra.mxu2 %v828_v31  ;;  %1197 = vmatpush.msra.mxu3 %v812_v32 }
  0xee   : > { %851 = vmatpush.msra.mxu0 %v828_v31  ;;  %916 = vmatpush.msra.mxu1 %v812_v32 }
  0xef   : > { %1182 = vmatpush.msra.mxu2 %v827_v41  ;;  %1198 = vmatpush.msra.mxu3 %v811_v42 }
  0xf0   : > { %852 = vmatpush.msra.mxu0 %v827_v41  ;;  %917 = vmatpush.msra.mxu1 %v811_v42 }
  0xf1   : > { %1183 = vmatpush.msra.mxu2 %v826_v19  ;;  %1199 = vmatpush.msra.mxu3 %v810_v47 }
  0xf2   : > { %853 = vmatpush.msra.mxu0 %v826_v19  ;;  %918 = vmatpush.msra.mxu1 %v810_v47 }
  0xf3   : > { %580 = vadd.xlane.f32.xlu1 %v550_v1  ;;  %562 = vadd.xlane.f32.xlu0 %v541_v28 }
  0xf4   : > { %1184 = vmatpush.msra.mxu2 %v825_v21  ;;  %1200 = vmatpush.msra.mxu3 %v809_v57 }
  0xf5   : > { %854 = vmatpush.msra.mxu0 %v825_v21  ;;  %919 = vmatpush.msra.mxu1 %v809_v57 }
  0xf6   : > { %1185 = vmatpush.msra.mxu2 %v824_v58  ;;  %1201 = vmatpush.msra.mxu3 %v808_v36 }
  0xf7   : > { %855 = vmatpush.msra.mxu0 %v824_v58  ;;  %920 = vmatpush.msra.mxu1 %v808_v36 }
 0x13d   : > { %v571_v62 = vpop.xlane.xlu2 %570 }
 0x13e   : > { %v569_v63 = vpop.xlane.xlu1 %568  ;;  %v593_v0 = vmul.f32 0.00390625, %v571_v62 }
 0x13f   : > { %v592_v38 = vmul.f32 0.00390625, %v569_v63 }
 0x140   : > { %v1925_v39 = vadd.f32 1e-05, %v593_v0 }
 0x141   : > { %v608_v27 = vadd.f32 1e-05, %v592_v38 }
 0x142   : > { %1297 = vrsqrt.f32 %v1925_v39  ;;  %vm712_vm2 = vweird.f32 %v1925_v39 }
 0x143   : > { %1299 = vrsqrt.f32 %v608_v27  ;;  %vm702_vm1 = vweird.f32 %v608_v27 }
 0x145   : > { %v573_v1 = vpop.xlane.xlu2 %572 }
 0x146   : > { %v455_v28 = vpop.xlane.xlu1 %454  ;;  %v594_v9 = vmul.f32 0.00390625, %v573_v1  ;;  %v553_v2 = vpop.xlane.xlu0 %552 }
 0x147   : > { %v471_v10 = vmul.f32 0.00390625, %v455_v28  ;;  %v584_v7 = vmul.f32 0.00390625, %v553_v2 }
 0x148   : > { %v1928_v8 = vpop.eup %1297  ;;  %v1930_v17 = vadd.f32 1e-05, %v594_v9 }
 0x149   : > { %v1933_v13 = vsub.f32 %v1800_v3, %v471_v10  ;;  %v1936_v26 = vsub.f32 %v1803_v4, %v471_v10  ;;  %v1300_v29 = vpop.eup %1299  ;;  %v707_v30 = vmul.f32 %v1928_v8, %v1925_v39  ;;  %v1940_v18 = vadd.f32 1e-05, %v584_v7 }
 0x14a   : > { %v697_v34 = vmul.f32 %v1300_v29, %v608_v27  ;;  %1301 = vrsqrt.f32 %v1930_v17  ;;  %vm703_vm0 = vweird.f32 %v1300_v29  ;;  %vm713_vm4 = vweird.f32 %v1928_v8 }
 0x14b   : > { %v519_v35 = vmul.f32 %v1933_v13, %v1933_v13  ;;  %v708_v40 = vmul.f32 %v1928_v8, %v707_v30  ;;  %1303 = vrsqrt.f32 %v1940_v18  ;;  %v535_v3 = vmul.f32 %v1936_v26, %v1936_v26  ;;  %vm704_vm3 = vmor %vm702_vm1, %vm703_vm0 }
 0x14c   : > { %v698_v4 = vmul.f32 %v1300_v29, %v697_v34  ;;  %vm714_vm5 = vmor %vm712_vm2, %vm713_vm4  ;;  %vm722_vm7 = vweird.f32 %v1930_v17  ;;  %vm622_vm8 = vweird.f32 %v1940_v18 }
 0x14d   : > { %v709_v31 = vmul.f32 0.5, %v708_v40  ;;  %v559_v32 = vpop.xlane.xlu2 %558  ;;  %v551_v42 = vadd.f32 %v535_v3, %v519_v35 }
 0x14e   : > { %v555_v41 = vpop.xlane.xlu1 %554  ;;  %v699_v19 = vmul.f32 0.5, %v698_v4  ;;  %v587_v47 = vmul.f32 0.00390625, %v559_v32  ;;  %v439_v57 = vpop.xlane.xlu0 %438 }
 0x14f   : > { %v585_v21 = vmul.f32 0.00390625, %v555_v41  ;;  %v463_v58 = vmul.f32 0.00390625, %v439_v57  ;;  %582 = vadd.xlane.f32.xlu0 %v551_v42  ;;  %v710_v1 = vsub.f32 1.5, %v709_v31 }
 0x150   : > { %v1949_v36 = vpop.eup %1301  ;;  %v700_v62 = vsub.f32 1.5, %v699_v19  ;;  %v1951_v63 = vadd.f32 1e-05, %v587_v47 }
 0x151   : > { %v1953_v0 = vadd.f32 1e-05, %v585_v21  ;;  %v1304_v38 = vpop.eup %1303  ;;  %v717_v28 = vmul.f32 %v1949_v36, %v1930_v17  ;;  %v1958_v9 = vsub.f32 %v1834_v45, %v463_v58  ;;  %v1961_v10 = vsub.f32 %v1837_v46, %v463_v58 }
 0x152   : > { %v617_v2 = vmul.f32 %v1304_v38, %v1940_v18  ;;  %1305 = vrsqrt.f32 %v1951_v63  ;;  %v701_v30 = vmul.f32 %v1300_v29, %v700_v62  ;;  %v711_v4 = vmul.f32 %v1928_v8, %v710_v1 }
 0x153   : > { %v718_v7 = vmul.f32 %v1949_v36, %v717_v28  ;;  %1307 = vrsqrt.f32 %v1953_v0  ;;  %v511_v34 = vmul.f32 %v1958_v9, %v1958_v9  ;;  %v527_v46 = vmul.f32 %v1961_v10, %v1961_v10 }
 0x154   : > { %v618_v45 = vmul.f32 %v1304_v38, %v617_v2  ;;  %v705_v3 = vsel %vm704_vm3, %v1300_v29, %v701_v30  ;;  %vm623_vm6 = vweird.f32 %v1304_v38  ;;  %v715_v39 = vsel %vm714_vm5, %v1928_v8, %v711_v4 }
 0x155   : > { %v719_v27 = vmul.f32 0.5, %v718_v7  ;;  %v579_v35 = vpop.xlane.xlu2 %578  ;;  %v800_v19 = vmul.f32 %v705_v3, %v1779_v51  ;;  %v784_v21 = vmul.f32 %v705_v3, %v1777_v50  ;;  %v543_v57 = vadd.f32 %v527_v46, %v511_v34  ;;  %vm624_vm9 = vmor %vm622_vm8, %vm623_vm6 }
 0x156   : > { %v575_v40 = vpop.xlane.xlu1 %574  ;;  %v619_v31 = vmul.f32 0.5, %v618_v45  ;;  %v597_v32 = vmul.f32 0.00390625, %v579_v35  ;;  %v557_v42 = vpop.xlane.xlu0 %556  ;;  %vm723_vm10 = vweird.f32 %v1949_v36  ;;  %v801_v8 = vmul.f32 %v715_v39, %v1775_v49 }
 0x157   : > { %v595_v41 = vmul.f32 0.00390625, %v575_v40  ;;  %v586_v47 = vmul.f32 0.00390625, %v557_v42  ;;  %880 = vmatmul.f32.vlgmr.msra.gmra.mxu2 %v800_v19  ;;  %945 = vmatmul.f32.vlgmr.msra.gmra.mxu3 %v784_v21  ;;  %v720_v50 = vsub.f32 1.5, %v719_v27  ;;  %vm632_vm11 = vweird.f32 %v1953_v0  ;;  %vm724_vm12 = vmor %vm722_vm7, %vm723_vm10 }
 0x158   : > { %v1979_v58 = vpop.eup %1305  ;;  %v620_v62 = vsub.f32 1.5, %v619_v31  ;;  %v1981_v28 = vadd.f32 1e-05, %v597_v32  ;;  %566 = vadd.xlane.f32.xlu1 %v543_v57  ;;  %v785_v32 = vmul.f32 %v715_v39, %v1773_v48  ;;  %vm652_vm4 = vweird.f32 %v1951_v63 }
 0x159   : > { %v1983_v29 = vadd.f32 1e-05, %v595_v41  ;;  %v1985_v1 = vpop.eup %1307  ;;  %v1987_v2 = vadd.f32 1e-05, %v586_v47  ;;  %v647_v30 = vmul.f32 %v1979_v58, %v1951_v63  ;;  %v721_v3 = vmul.f32 %v1949_v36, %v720_v50 }
 0x15a   : > { %v627_v51 = vmul.f32 %v1985_v1, %v1953_v0  ;;  %1309 = vrsqrt.f32 %v1981_v28  ;;  %v621_v7 = vmul.f32 %v1304_v38, %v620_v62  ;;  %vm633_vm13 = vweird.f32 %v1985_v1 }
 0x15b   : > { %1311 = vrsqrt.f32 %v1983_v29  ;;  %v648_v49 = vmul.f32 %v1979_v58, %v647_v30  ;;  %v725_v47 = vsel %vm724_vm12, %v1949_v36, %v721_v3  ;;  %vm732_vm14 = vweird.f32 %v1983_v29  ;;  %vm634_vm0 = vmor %vm632_vm11, %vm633_vm13 }
 0x15c   : > { %v628_v34 = vmul.f32 %v1985_v1, %v627_v51  ;;  %1313 = vrsqrt.f32 %v1987_v2  ;;  %v625_v46 = vsel %vm624_vm9, %v1304_v38, %v621_v7  ;;  %vm642_vm15 = vweird.f32 %v1987_v2 }
 0x15d   : > { %v792_v40 = vmul.f32 %v625_v46, %v1809_v6  ;;  %v776_v31 = vmul.f32 %v625_v46, %v1806_v5  ;;  %v565_v17 = vpop.xlane.xlu2 %564  ;;  %v649_v57 = vmul.f32 0.5, %v648_v49  ;;  %v802_v30 = vmul.f32 %v725_v47, %v1785_v53 }
 0x15e   : > { %v561_v45 = vpop.xlane.xlu1 %560  ;;  %v629_v27 = vmul.f32 0.5, %v628_v34  ;;  %v577_v18 = vpop.xlane.xlu0 %576  ;;  %v590_v39 = vmul.f32 0.00390625, %v565_v17  ;;  %vm653_vm6 = vweird.f32 %v1979_v58  ;;  %vm752_vm11 = vweird.f32 %v1981_v28 }
 0x15f   : > { %v588_v35 = vmul.f32 0.00390625, %v561_v45  ;;  %v596_v4 = vmul.f32 0.00390625, %v577_v18  ;;  %856 = vmatmul.f32.vlgmr.msra.gmra.mxu0 %v792_v40  ;;  %883 = vmatmul.f32.gmra.mxu2 %v801_v8  ;;  %v786_v18 = vmul.f32 %v725_v47, %v1782_v52  ;;  %vm654_vm9 = vmor %vm652_vm4, %vm653_vm6 }
 0x160   : > { %v2009_v38 = vpop.eup %1309  ;;  %v630_v41 = vsub.f32 1.5, %v629_v27  ;;  %921 = vmatmul.f32.vlgmr.msra.gmra.mxu1 %v776_v31  ;;  %948 = vmatmul.f32.gmra.mxu3 %v785_v32  ;;  %v2038_v32 = vadd.f32 1e-05, %v590_v39 }
 0x161   : > { %v2012_v42 = vadd.f32 1e-05, %v588_v35  ;;  %v1312_v6 = vpop.eup %1311  ;;  %v2015_v19 = vadd.f32 1e-05, %v596_v4  ;;  %v747_v36 = vmul.f32 %v2009_v38, %v1981_v28  ;;  %vm753_vm12 = vweird.f32 %v2009_v38 }
 0x162   : > { %v1314_v48 = vpop.eup %1313  ;;  %v727_v5 = vmul.f32 %v1312_v6, %v1983_v29  ;;  %v631_v50 = vmul.f32 %v1985_v1, %v630_v41  ;;  %vm733_vm1 = vweird.f32 %v1312_v6  ;;  %v650_v29 = vsub.f32 1.5, %v649_v57 }
 0x163   : > { %v637_v21 = vmul.f32 %v1314_v48, %v1987_v2  ;;  %1315 = vrsqrt.f32 %v2012_v42  ;;  %vm643_vm2 = vweird.f32 %v1314_v48  ;;  %vm734_vm3 = vmor %vm732_vm14, %vm733_vm1  ;;  %vm742_vm7 = vweird.f32 %v2015_v19 }
 0x164   : > { %v728_v62 = vmul.f32 %v1312_v6, %v727_v5  ;;  %1317 = vrsqrt.f32 %v2015_v19  ;;  %v635_v0 = vsel %vm634_vm0, %v1985_v1, %v631_v50  ;;  %vm644_vm5 = vmor %vm642_vm15, %vm643_vm2  ;;  %vm662_vm13 = vweird.f32 %v2012_v42 }
 0x165   : > { %v638_v51 = vmul.f32 %v1314_v48, %v637_v21  ;;  %v793_v35 = vmul.f32 %v635_v0, %v1817_v16  ;;  %v777_v4 = vmul.f32 %v635_v0, %v1814_v15  ;;  %v748_v16 = vmul.f32 %v2009_v38, %v747_v36  ;;  %vm754_vm15 = vmor %vm752_vm11, %vm753_vm12 }
 0x166   : > { %v581_v7 = vpop.xlane.xlu1 %580  ;;  %v729_v34 = vmul.f32 0.5, %v728_v62  ;;  %v563_v46 = vpop.xlane.xlu0 %562 }
 0x167   : > { %v598_v45 = vmul.f32 0.00390625, %v581_v7  ;;  %v639_v8 = vmul.f32 0.5, %v638_v51  ;;  %v589_v27 = vmul.f32 0.00390625, %v563_v46  ;;  %886 = vmatmul.f32.gmra.mxu2 %v802_v30  ;;  %859 = vmatmul.f32.gmra.mxu0 %v793_v35  ;;  %v749_v36 = vmul.f32 0.5, %v748_v16 }
 0x168   : > { %v730_v40 = vsub.f32 1.5, %v729_v34  ;;  %951 = vmatmul.f32.gmra.mxu3 %v786_v18  ;;  %924 = vmatmul.f32.gmra.mxu1 %v777_v4 }
 0x169   : > { %v2033_v3 = vadd.f32 1e-05, %v598_v45  ;;  %v2036_v53 = vpop.eup %1315  ;;  %v640_v31 = vsub.f32 1.5, %v639_v8  ;;  %v2040_v1 = vadd.f32 1e-05, %v589_v27 }
 0x16a   : > { %v1318_v52 = vpop.eup %1317  ;;  %v657_v15 = vmul.f32 %v2036_v53, %v2012_v42  ;;  %v731_v49 = vmul.f32 %v1312_v6, %v730_v40  ;;  %vm663_vm14 = vweird.f32 %v2036_v53 }
 0x16b   : > { %1319 = vrsqrt.f32 %v2033_v3  ;;  %v737_v41 = vmul.f32 %v1318_v52, %v2015_v19  ;;  %v641_v17 = vmul.f32 %v1314_v48, %v640_v31  ;;  %vm743_vm8 = vweird.f32 %v1318_v52  ;;  %vm664_vm0 = vmor %vm662_vm13, %vm663_vm14 }
 0x16c   : > { %1321 = vrsqrt.f32 %v2040_v1  ;;  %v658_v5 = vmul.f32 %v2036_v53, %v657_v15  ;;  %v735_v47 = vsel %vm734_vm3, %v1312_v6, %v731_v49  ;;  %vm744_vm10 = vmor %vm742_vm7, %vm743_vm8  ;;  %vm762_vm1 = vweird.f32 %v2033_v3 }
 0x16d   : > { %v738_v21 = vmul.f32 %v1318_v52, %v737_v41  ;;  %v803_v62 = vmul.f32 %v735_v47, %v1843_v55  ;;  %v787_v50 = vmul.f32 %v735_v47, %v1840_v54  ;;  %1323 = vrsqrt.f32 %v2038_v32 }
 0x16e   : > { %v645_v51 = vsel %vm644_vm5, %v1314_v48, %v641_v17  ;;  %v659_v7 = vmul.f32 0.5, %v658_v5  ;;  %v651_v54 = vmul.f32 %v1979_v58, %v650_v29  ;;  %vm672_vm3 = vweird.f32 %v2040_v1 }
 0x16f   : > { %v739_v2 = vmul.f32 0.5, %v738_v21  ;;  %v794_v57 = vmul.f32 %v645_v51, %v1853_v22  ;;  %v778_v39 = vmul.f32 %v645_v51, %v1850_v59  ;;  %889 = vmatmul.f32.gmra.mxu2 %v803_v62  ;;  %v750_v22 = vsub.f32 1.5, %v749_v36 }
 0x170   : > { %954 = vmatmul.f32.gmra.mxu3 %v787_v50  ;;  %v660_v0 = vsub.f32 1.5, %v659_v7  ;;  %v655_v27 = vsel %vm654_vm9, %v1979_v58, %v651_v54  ;;  %vm682_vm7 = vweird.f32 %v2038_v32 }
 0x171   : > { %v2063_v6 = vpop.eup %1319  ;;  %v740_v30 = vsub.f32 1.5, %v739_v2  ;;  %862 = vmatmul.f32.gmra.mxu0 %v794_v57  ;;  %927 = vmatmul.f32.gmra.mxu1 %v778_v39  ;;  %v795_v40 = vmul.f32 %v655_v27, %v1831_v44  ;;  %v751_v4 = vmul.f32 %v2009_v38, %v750_v22 }
 0x172   : > { %v1322_v55 = vpop.eup %1321  ;;  %v757_v34 = vmul.f32 %v2063_v6, %v2033_v3  ;;  %v661_v16 = vmul.f32 %v2036_v53, %v660_v0  ;;  %vm763_vm2 = vweird.f32 %v2063_v6 }
 0x173   : > { %v667_v59 = vmul.f32 %v1322_v55, %v2040_v1  ;;  %v741_v45 = vmul.f32 %v1318_v52, %v740_v30  ;;  %v1324_v46 = vpop.eup %1323  ;;  %vm673_vm4 = vweird.f32 %v1322_v55  ;;  %vm764_vm5 = vmor %vm762_vm1, %vm763_vm2 }
 0x174   : > { %v758_v48 = vmul.f32 %v2063_v6, %v757_v34  ;;  %v677_v58 = vmul.f32 %v1324_v46, %v2038_v32  ;;  %v665_v49 = vsel %vm664_vm0, %v2036_v53, %v661_v16  ;;  %vm674_vm6 = vmor %vm672_vm3, %vm673_vm4  ;;  %vm683_vm8 = vweird.f32 %v1324_v46 }
 0x175   : > { %v668_v8 = vmul.f32 %v1322_v55, %v667_v59  ;;  %v745_v35 = vsel %vm744_vm10, %v1318_v52, %v741_v45  ;;  %v779_v52 = vmul.f32 %v655_v27, %v1828_v43  ;;  %v796_v28 = vmul.f32 %v665_v49, %v1878_v11  ;;  %vm684_vm9 = vmor %vm682_vm7, %vm683_vm8  ;;  %v2115_v59 = vld [vmem:[%s2191_s4] ss:$0 sm:$0xff] }
 0x176   : > { %v804_v63 = vmul.f32 %v745_v35, %v1885_v12  ;;  %v788_v19 = vmul.f32 %v745_v35, %v1872_v14  ;;  %v759_v18 = vmul.f32 0.5, %v758_v48  ;;  %v755_v14 = vsel %vm754_vm15, %v2009_v38, %v751_v4 }
 0x177   : > { %v669_v31 = vmul.f32 0.5, %v668_v8  ;;  %v678_v12 = vmul.f32 %v1324_v46, %v677_v58  ;;  %v805_v43 = vmul.f32 %v755_v14, %v1869_v25  ;;  %v789_v42 = vmul.f32 %v755_v14, %v1866_v24 }
 0x178   : > { %892 = vmatmul.f32.gmra.mxu2 %v804_v63  ;;  %957 = vmatmul.f32.gmra.mxu3 %v788_v19  ;;  %v760_v44 = vsub.f32 1.5, %v759_v18  ;;  %v780_v29 = vmul.f32 %v665_v49, %v1875_v33 }
 0x179   : > { %865 = vmatmul.f32.gmra.mxu0 %v795_v40  ;;  %930 = vmatmul.f32.gmra.mxu1 %v779_v52  ;;  %v670_v15 = vsub.f32 1.5, %v669_v31  ;;  %v679_v38 = vmul.f32 0.5, %v678_v12 }
 0x17a   : > { %v761_v41 = vmul.f32 %v2063_v6, %v760_v44 }
 0x17b   : > { %v671_v53 = vmul.f32 %v1322_v55, %v670_v15  ;;  %v680_v25 = vsub.f32 1.5, %v679_v38 }
 0x17c   : > { %v765_v3 = vsel %vm764_vm5, %v2063_v6, %v761_v41 }
 0x17d   : > { %v675_v1 = vsel %vm674_vm6, %v1322_v55, %v671_v53  ;;  %v806_v24 = vmul.f32 %v765_v3, %v1909_v60  ;;  %v790_v5 = vmul.f32 %v765_v3, %v1906_v23  ;;  %v681_v17 = vmul.f32 %v1324_v46, %v680_v25 }
 0x17e   : > { %v797_v11 = vmul.f32 %v675_v1, %v1915_v61  ;;  %v781_v33 = vmul.f32 %v675_v1, %v1912_v37 }
 0x17f   : > { %v685_v47 = vsel %vm684_vm9, %v1324_v46, %v681_v17 }
 0x180   : > { %895 = vmatmul.f32.gmra.mxu2 %v805_v43  ;;  %960 = vmatmul.f32.gmra.mxu3 %v789_v42  ;;  %v798_v21 = vmul.f32 %v685_v47, %v1897_v20  ;;  %v782_v32 = vmul.f32 %v685_v47, %v1894_v56 }
 0x181   : > { %868 = vmatmul.f32.gmra.mxu0 %v796_v28  ;;  %933 = vmatmul.f32.gmra.mxu1 %v780_v29 }
 0x188   : > { %898 = vmatmul.f32.gmra.mxu2 %v806_v24  ;;  %963 = vmatmul.f32.gmra.mxu3 %v790_v5 }
 0x189   : > { %871 = vmatmul.f32.gmra.mxu0 %v797_v11  ;;  %936 = vmatmul.f32.gmra.mxu1 %v781_v33 }
 0x191   : > { %874 = vmatmul.f32.gmra.mxu0 %v798_v21  ;;  %939 = vmatmul.f32.gmra.mxu1 %v782_v32 }
 0x1c2   : > { %v583_v60 = vpop.xlane.xlu0 %582 }
 0x1c3   : > { %v599_v62 = vmul.f32 0.00390625, %v583_v60 }
 0x1c5   : > { %v615_v61 = vadd.f32 1e-05, %v599_v62 }
 0x1c7   : > { %1325 = vrsqrt.f32 %v615_v61  ;;  %vm772_vm11 = vweird.f32 %v615_v61 }
 0x1cb   : > { %v567_v23 = vpop.xlane.xlu1 %566 }
 0x1cc   : > { %v591_v36 = vmul.f32 0.00390625, %v567_v23 }
 0x1cd   : > { %v1326_v50 = vpop.eup %1325 }
 0x1ce   : > { %v767_v37 = vmul.f32 %v1326_v50, %v615_v61  ;;  %v607_v51 = vadd.f32 1e-05, %v591_v36  ;;  %vm773_vm10 = vweird.f32 %v1326_v50 }
 0x1cf   : > { %vm774_vm12 = vmor %vm772_vm11, %vm773_vm10 }
 0x1d0   : > { %v768_v2 = vmul.f32 %v1326_v50, %v767_v37  ;;  %1327 = vrsqrt.f32 %v607_v51  ;;  %vm692_vm14 = vweird.f32 %v607_v51 }
 0x1d2   : > { %v769_v57 = vmul.f32 0.5, %v768_v2 }
 0x1d4   : > { %v770_v39 = vsub.f32 1.5, %v769_v57 }
 0x1d6   : > { %v771_v20 = vmul.f32 %v1326_v50, %v770_v39  ;;  %v1328_v6 = vpop.eup %1327 }
 0x1d7   : > { %v687_v56 = vmul.f32 %v1328_v6, %v607_v51  ;;  %vm693_vm13 = vweird.f32 %v1328_v6 }
 0x1d8   : > { %v775_v7 = vsel %vm774_vm12, %v1326_v50, %v771_v20  ;;  %vm694_vm15 = vmor %vm692_vm14, %vm693_vm13 }
 0x1d9   : > { %v807_v54 = vmul.f32 %v775_v7, %v1936_v26  ;;  %v791_v55 = vmul.f32 %v775_v7, %v1933_v13  ;;  %v688_v30 = vmul.f32 %v1328_v6, %v687_v56 }
 0x1da   : > { %v881_v34 = vpop.f32.mrf.mxu2  ;;  %v946_v48 = vpop.f32.mrf.mxu3 }
 0x1db   : > { %901 = vmatmul.f32.gmra.mxu2 %v807_v54  ;;  %966 = vmatmul.f32.gmra.mxu3 %v791_v55  ;;  %v689_v22 = vmul.f32 0.5, %v688_v30  ;;  %v947_v45 = vadd.f32 %v946_v48, %v881_v34 }
 0x1dc   : > { %v857_v46 = vpop.f32.mrf.mxu0 }
 0x1dd   : > { %v690_v0 = vsub.f32 1.5, %v689_v22  ;;  %v922_v8 = vpop.f32.mrf.mxu1  ;;  %v982_v26 = vadd.f32 %v2115_v59, %v947_v45 }
 0x1de   : > { %v923_v13 = vadd.f32 %v922_v8, %v857_v46 }
 0x1df   : > { %v691_v27 = vmul.f32 %v1328_v6, %v690_v0  ;;  %998 = vst [vmem:[%s2119_s8 + $0x40] sm:$0xff] %v982_v26 }
 0x1e0   : > { %v974_v35 = vadd.f32 %v2115_v59, %v923_v13 }
 0x1e1   : > { %v695_v63 = vsel %vm694_vm15, %v1328_v6, %v691_v27 }
 0x1e2   : > { %990 = vst [vmem:[%s2119_s8] sm:$0xff] %v974_v35  ;;  %v884_v19 = vpop.f32.mrf.mxu2  ;;  %v799_v18 = vmul.f32 %v695_v63, %v1961_v10  ;;  %v783_v40 = vmul.f32 %v695_v63, %v1958_v9 }
 0x1e3   : > { %v949_v4 = vpop.f32.mrf.mxu3 }
 0x1e4   : > { %v950_v58 = vadd.f32 %v949_v4, %v884_v19  ;;  %877 = vmatmul.f32.gmra.mxu0 %v799_v18  ;;  %942 = vmatmul.f32.gmra.mxu1 %v783_v40  ;;  %v860_v31 = vpop.f32.mrf.mxu0 }
 0x1e5   : > { %v925_v16 = vpop.f32.mrf.mxu1 }
 0x1e6   : > { %v983_v52 = vadd.f32 %v2115_v59, %v950_v58  ;;  %v926_v44 = vadd.f32 %v925_v16, %v860_v31 }
 0x1e8   : > { %999 = vst [vmem:[%s2119_s8 + $0x48] sm:$0xff] %v983_v52  ;;  %v975_v14 = vadd.f32 %v2115_v59, %v926_v44 }
 0x1ea   : > { %v887_v12 = vpop.f32.mrf.mxu2  ;;  %991 = vst [vmem:[%s2119_s8 + $0x8] sm:$0xff] %v975_v14 }
 0x1eb   : > { %v952_v15 = vpop.f32.mrf.mxu3 }
 0x1ec   : > { %v953_v10 = vadd.f32 %v952_v15, %v887_v12 }
 0x1ee   : > { %v863_v9 = vpop.f32.mrf.mxu0  ;;  %v984_v49 = vadd.f32 %v2115_v59, %v953_v10  ;;  %v928_v43 = vpop.f32.mrf.mxu1 }
 0x1ef   : > { %v929_v28 = vadd.f32 %v928_v43, %v863_v9 }
 0x1f0   : > { %1000 = vst [vmem:[%s2119_s8 + $0x50] sm:$0xff] %v984_v49 }
 0x1f1   : > { %v976_v42 = vadd.f32 %v2115_v59, %v929_v28 }
 0x1f2   : > { %v890_v41 = vpop.f32.mrf.mxu2 }
 0x1f3   : > { %992 = vst [vmem:[%s2119_s8 + $0x10] sm:$0xff] %v976_v42  ;;  %v955_v38 = vpop.f32.mrf.mxu3 }
 0x1f4   : > { %v956_v29 = vadd.f32 %v955_v38, %v890_v41 }
 0x1f6   : > { %v866_v53 = vpop.f32.mrf.mxu0  ;;  %v985_v3 = vadd.f32 %v2115_v59, %v956_v29  ;;  %v931_v25 = vpop.f32.mrf.mxu1 }
 0x1f7   : > { %v932_v1 = vadd.f32 %v931_v25, %v866_v53 }
 0x1f8   : > { %1001 = vst [vmem:[%s2119_s8 + $0x58] sm:$0xff] %v985_v3 }
 0x1f9   : > { %v977_v24 = vadd.f32 %v2115_v59, %v932_v1 }
 0x1fb   : > { %v893_v11 = vpop.f32.mrf.mxu2  ;;  %993 = vst [vmem:[%s2119_s8 + $0x18] sm:$0xff] %v977_v24  ;;  %v958_v5 = vpop.f32.mrf.mxu3 }
 0x1fc   : > { %v959_v33 = vadd.f32 %v958_v5, %v893_v11 }
 0x1fe   : > { %v869_v17 = vpop.f32.mrf.mxu0  ;;  %v986_v47 = vadd.f32 %v2115_v59, %v959_v33  ;;  %v934_v21 = vpop.f32.mrf.mxu1 }
 0x1ff   : > { %v935_v32 = vadd.f32 %v934_v21, %v869_v17 }
 0x200   : > { %1002 = vst [vmem:[%s2119_s8 + $0x60] sm:$0xff] %v986_v47 }
 0x201   : > { %v978_v60 = vadd.f32 %v2115_v59, %v935_v32 }
 0x203   : > { %v896_v62 = vpop.f32.mrf.mxu2  ;;  %994 = vst [vmem:[%s2119_s8 + $0x20] sm:$0xff] %v978_v60  ;;  %v961_v61 = vpop.f32.mrf.mxu3 }
 0x204   : > { %v962_v23 = vadd.f32 %v961_v61, %v896_v62 }
 0x206   : > { %v872_v50 = vpop.f32.mrf.mxu0  ;;  %v987_v36 = vadd.f32 %v2115_v59, %v962_v23  ;;  %v937_v37 = vpop.f32.mrf.mxu1 }
 0x207   : > { %v938_v51 = vadd.f32 %v937_v37, %v872_v50 }
 0x208   : > { %1003 = vst [vmem:[%s2119_s8 + $0x68] sm:$0xff] %v987_v36 }
 0x209   : > { %v979_v2 = vadd.f32 %v2115_v59, %v938_v51 }
 0x20b   : > { %v899_v57 = vpop.f32.mrf.mxu2  ;;  %995 = vst [vmem:[%s2119_s8 + $0x28] sm:$0xff] %v979_v2  ;;  %v964_v39 = vpop.f32.mrf.mxu3 }
 0x20c   : > { %v965_v20 = vadd.f32 %v964_v39, %v899_v57 }
 0x20e   : > { %v875_v6 = vpop.f32.mrf.mxu0  ;;  %v988_v56 = vadd.f32 %v2115_v59, %v965_v20  ;;  %v940_v7 = vpop.f32.mrf.mxu1 }
 0x20f   : > { %v941_v54 = vadd.f32 %v940_v7, %v875_v6 }
 0x210   : > { %1004 = vst [vmem:[%s2119_s8 + $0x70] sm:$0xff] %v988_v56 }
 0x211   : > { %v980_v55 = vadd.f32 %v2115_v59, %v941_v54 }
 0x213   : > { %996 = vst [vmem:[%s2119_s8 + $0x30] sm:$0xff] %v980_v55 }
 0x25e   : > { %v902_v30 = vpop.f32.mrf.mxu2  ;;  %v967_v34 = vpop.f32.mrf.mxu3 }
 0x25f   : > { %v968_v22 = vadd.f32 %v967_v34, %v902_v30 }
 0x261   : > { %v989_v48 = vadd.f32 %v2115_v59, %v968_v22  ;;  %v878_v45 = vpop.f32.mrf.mxu0  ;;  %v943_v46 = vpop.f32.mrf.mxu1 }
 0x262   : > { %v944_v0 = vadd.f32 %v943_v46, %v878_v45 }
 0x263   : > { %1005 = vst [vmem:[%s2119_s8 + $0x78] sm:$0xff] %v989_v48 }
 0x264   : > { %v981_v8 = vadd.f32 %v2115_v59, %v944_v0 }
 0x266   : > { %997 = vst [vmem:[%s2119_s8 + $0x38] sm:$0xff] %v981_v8 }
 0x267   : > { %1416 = shalt.err (!%p1413_p9)
}
 0x268   : > { %s1485_s0 = smov 128   ;;  %s1486_s29 = smov 8  }
 0x269   : > { %1228 = dma.vmem_to_hbm [thread:$0]  (%p1569_p11), %s1020_s11, 2048, %s1022_s12, %s1007_s22, %s1485_s0, %s1485_s0, %s1486_s29  }
 0x26a PF: > { %p1245_p10 = scmp.ge.s32.totalorder %s1467_s21, 2  ;;  %s1036_s26 = sand.u32 1, %s1455_s18  }
 0x26b   : > { %s1037_s8 = scalar_lea.sflag [#allocation4], %s1036_s26 }
 0x26c   : > { %p1238_p13 = pnand %p1245_p10, %p1573_p12 }
 0x26e   : > { %p1239_p1 = pneg %p1238_p13 }
 0x270   : > { %1450 = dma.done.wait (%p1239_p1), %s1037_s8, 2048  }
 0x271   : > { %1452 = vsyncadd (%p1239_p1), %s1037_s8, 4294965248  ;;  %p22_p0 = scmp.ge.s32.totalorder %s1542_s24, 6   ;;  %s2202_s18 = smov %s1459_s19 }
 0x272   : > { %s2203_s19 = smov %s1463_s20  ;;  %s2204_s20 = smov %s1554_s27 }
 0x273   : > { %s2205_s21 = smov %s1542_s24  ;;  %24 = sbr.rel (!%p22_p0) target bundleno = 10 (0xa), region = 116 }
 0x278   :  { %1043 = vsyncpa [#allocation3], 1 }
 0x279   :  { %1045 = vsyncpa [#allocation3 + $0x1], 1 }
 0x27a   :  { %1046 = vsyncpa [#allocation6], 1 }
 0x27b   :  { %1048 = vsyncpa [#allocation6 + $0x1], 1 }
 0x27c   :  { %1049 = vsyncpa [#allocation9], 1 }
 0x27d   :  { %1050 = vsyncpa [#allocation4], 1 }
 0x27e   :  { %1052 = vsyncpa [#allocation4 + $0x1], 1 }

</bundles_post_ra>
